<compile_context>
chip_gen: v7x
topology: tpu7x:2x2x1
jax: 0.10.0
libtpu: 0.0.40
codegen_flags: <defaults>
</compile_context>

<pallas_src>
import functools
import math

import jax
import jax.numpy as jnp
from jax.experimental import pallas as pl
from jax.experimental.pallas import tpu as pltpu


_VMEM_LIMIT = 48 * 1024 * 1024  # explicit scoped-VMEM budget (fits v7x's 64 MiB)


def _tile(dim, target):
    """Use `target` if it evenly tiles `dim`, otherwise fall back to the full dim."""
    return target if (dim >= target and dim % target == 0) else dim


# ---------------------------------------------------------------------------
# Tiled linear kernel: y = act(x @ w [+ b]) [+ residual]
# ---------------------------------------------------------------------------
def _linear_kernel(act, has_bias, has_resid, x_ref, w_ref, *refs):
    idx = 0
    b_ref = None
    r_ref = None
    if has_bias:
        b_ref = refs[idx]
        idx += 1
    if has_resid:
        r_ref = refs[idx]
        idx += 1
    o_ref = refs[idx]
    acc_ref = refs[idx + 1]

    k = pl.program_id(2)

    @pl.when(k == 0)
    def _():
        acc_ref[...] = jnp.zeros(acc_ref.shape, jnp.float32)

    acc_ref[...] += jnp.dot(x_ref[...], w_ref[...],
                            preferred_element_type=jnp.float32)

    @pl.when(k == pl.num_programs(2) - 1)
    def _():
        y = acc_ref[...]
        if has_bias:
            y = y + b_ref[...].astype(jnp.float32)
        if act == "silu":
            y = y * jax.nn.sigmoid(y)
        if has_resid:
            y = y + r_ref[...].astype(jnp.float32)
        o_ref[...] = y.astype(o_ref.dtype)


def linear(x, w, b=None, act="none", residual=None, tm=256, tn=256, tk=512):
    """x:(M,K) w:(K,N) -> (M,N), f32 accumulation, output in x.dtype."""
    M, K = x.shape
    N = w.shape[1]
    tm, tn, tk = _tile(M, tm), _tile(N, tn), _tile(K, tk)
    has_bias = b is not None
    has_resid = residual is not None

    in_specs = [
        pl.BlockSpec((tm, tk), lambda i, j, k: (i, k)),
        pl.BlockSpec((tk, tn), lambda i, j, k: (k, j)),
    ]
    operands = [x, w]
    if has_bias:
        in_specs.append(pl.BlockSpec((1, tn), lambda i, j, k: (0, j)))
        operands.append(b.reshape(1, N))
    if has_resid:
        in_specs.append(pl.BlockSpec((tm, tn), lambda i, j, k: (i, j)))
        operands.append(residual)

    return pl.pallas_call(
        functools.partial(_linear_kernel, act, has_bias, has_resid),
        grid=(M // tm, N // tn, K // tk),
        in_specs=in_specs,
        out_specs=pl.BlockSpec((tm, tn), lambda i, j, k: (i, j)),
        out_shape=jax.ShapeDtypeStruct((M, N), x.dtype),
        scratch_shapes=[pltpu.VMEM((tm, tn), jnp.float32)],
        compiler_params=pltpu.CompilerParams(
            dimension_semantics=("parallel", "parallel", "arbitrary"),
            vmem_limit_bytes=_VMEM_LIMIT),
    )(*operands)


# ---------------------------------------------------------------------------
# LayerNorm fused into a linear: y = act(LN(x)*g @ w [+ b]) [+ residual]
# (full K per block; N and M tiled)
# ---------------------------------------------------------------------------
def _ln_linear_kernel(eps, act, has_bias, has_resid, x_ref, g_ref, w_ref, *refs):
    idx = 0
    b_ref = None
    r_ref = None
    if has_bias:
        b_ref = refs[idx]
        idx += 1
    if has_resid:
        r_ref = refs[idx]
        idx += 1
    o_ref = refs[idx]

    x = x_ref[...].astype(jnp.float32)
    mu = jnp.mean(x, axis=-1, keepdims=True)
    xc = x - mu
    var = jnp.mean(xc * xc, axis=-1, keepdims=True)
    xn = xc * jax.lax.rsqrt(var + eps) * g_ref[...].astype(jnp.float32)

    y = jnp.dot(xn.astype(w_ref.dtype), w_ref[...],
                preferred_element_type=jnp.float32)
    if has_bias:
        y = y + b_ref[...].astype(jnp.float32)
    if act == "silu":
        y = y * jax.nn.sigmoid(y)
    if has_resid:
        y = y + r_ref[...].astype(jnp.float32)
    o_ref[...] = y.astype(o_ref.dtype)


def ln_linear(x, gamma, w, b=None, act="none", residual=None,
              eps=1e-5, tm=256, tn=256):
    M, K = x.shape
    N = w.shape[1]
    tm, tn = _tile(M, tm), _tile(N, tn)
    has_bias = b is not None
    has_resid = residual is not None

    in_specs = [
        pl.BlockSpec((tm, K), lambda i, j: (i, 0)),
        pl.BlockSpec((1, K), lambda i, j: (0, 0)),
        pl.BlockSpec((K, tn), lambda i, j: (0, j)),
    ]
    operands = [x, gamma.reshape(1, K), w]
    if has_bias:
        in_specs.append(pl.BlockSpec((1, tn), lambda i, j: (0, j)))
        operands.append(b.reshape(1, N))
    if has_resid:
        in_specs.append(pl.BlockSpec((tm, tn), lambda i, j: (i, j)))
        operands.append(residual)

    return pl.pallas_call(
        functools.partial(_ln_linear_kernel, eps, act, has_bias, has_resid),
        grid=(M // tm, N // tn),
        in_specs=in_specs,
        out_specs=pl.BlockSpec((tm, tn), lambda i, j: (i, j)),
        out_shape=jax.ShapeDtypeStruct((M, N), x.dtype),
        compiler_params=pltpu.CompilerParams(
            dimension_semantics=("parallel", "parallel"),
            vmem_limit_bytes=_VMEM_LIMIT),
    )(*operands)


# ---------------------------------------------------------------------------
# LayerNorm fused with GLU feed-forward projection:
#   xn = LN(x)*g ; a = xn@wa + ba ; gt = xn@wg + bg ; y = a * SiLU(gt)
# Two lane-dense (K, ff_inner) matmuls instead of one (K, 2*ff_inner) + slicing.
# ---------------------------------------------------------------------------
def _ln_glu_kernel(eps, x_ref, g_ref, wa_ref, wg_ref, ba_ref, bg_ref, o_ref):
    x = x_ref[...].astype(jnp.float32)
    mu = jnp.mean(x, axis=-1, keepdims=True)
    xc = x - mu
    var = jnp.mean(xc * xc, axis=-1, keepdims=True)
    xn = xc * jax.lax.rsqrt(var + eps) * g_ref[...].astype(jnp.float32)
    xn = xn.astype(wa_ref.dtype)

    a = jnp.dot(xn, wa_ref[...], preferred_element_type=jnp.float32)
    a = a + ba_ref[...].astype(jnp.float32)
    gt = jnp.dot(xn, wg_ref[...], preferred_element_type=jnp.float32)
    gt = gt + bg_ref[...].astype(jnp.float32)
    o_ref[...] = (a * (gt * jax.nn.sigmoid(gt))).astype(o_ref.dtype)


def ln_glu(x, gamma, wa, wg, ba, bg, eps=1e-5, tm=256, tn=256):
    M, K = x.shape
    N = wa.shape[1]
    tm, tn = _tile(M, tm), _tile(N, tn)
    return pl.pallas_call(
        functools.partial(_ln_glu_kernel, eps),
        grid=(M // tm, N // tn),
        in_specs=[
            pl.BlockSpec((tm, K), lambda i, j: (i, 0)),
            pl.BlockSpec((1, K), lambda i, j: (0, 0)),
            pl.BlockSpec((K, tn), lambda i, j: (0, j)),
            pl.BlockSpec((K, tn), lambda i, j: (0, j)),
            pl.BlockSpec((1, tn), lambda i, j: (0, j)),
            pl.BlockSpec((1, tn), lambda i, j: (0, j)),
        ],
        out_specs=pl.BlockSpec((tm, tn), lambda i, j: (i, j)),
        out_shape=jax.ShapeDtypeStruct((M, N), x.dtype),
        compiler_params=pltpu.CompilerParams(
            dimension_semantics=("parallel", "parallel"),
            vmem_limit_bytes=_VMEM_LIMIT),
    )(x, gamma.reshape(1, K), wa, wg, ba.reshape(1, N), bg.reshape(1, N))


# ---------------------------------------------------------------------------
# Flash-style attention: grid (B, H, q_tiles, kv_tiles), online softmax,
# no bias tensor (masks are all-True in this path), approx reciprocal.
# ---------------------------------------------------------------------------
def _attn_kernel(scale, q_ref, k_ref, v_ref, o_ref, m_ref, l_ref, acc_ref):
    kv = pl.program_id(3)

    @pl.when(kv == 0)
    def _():
        m_ref[...] = jnp.full(m_ref.shape, -jnp.inf, jnp.float32)
        l_ref[...] = jnp.zeros(l_ref.shape, jnp.float32)
        acc_ref[...] = jnp.zeros(acc_ref.shape, jnp.float32)

    q = q_ref[0, 0]                      # (tq, Dh)
    k = k_ref[0, 0]                      # (tkv, Dh)
    v = v_ref[0, 0]                      # (tkv, Dh)

    s = jax.lax.dot_general(q, k, (((1,), (1,)), ((), ())),
                            preferred_element_type=jnp.float32) * scale
    m_prev = m_ref[...]
    m_new = jnp.maximum(m_prev, jnp.max(s, axis=-1, keepdims=True))
    alpha = jnp.exp(m_prev - m_new)
    p = jnp.exp(s - m_new)
    l_ref[...] = alpha * l_ref[...] + jnp.sum(p, axis=-1, keepdims=True)
    acc_ref[...] = alpha * acc_ref[...] + jnp.dot(
        p.astype(v.dtype), v, preferred_element_type=jnp.float32)
    m_ref[...] = m_new

    @pl.when(kv == pl.num_programs(3) - 1)
    def _():
        inv_l = pl.reciprocal(l_ref[...], approx=True)
        o_ref[0, 0] = (acc_ref[...] * inv_l).astype(o_ref.dtype)


def attention(q, k, v, tq=512, tkv=512):
    """q:(B,H,Lq,Dh) k,v:(B,H,Lk,Dh) -> (B,H,Lq,Dh); unmasked softmax(QK^T)V."""
    B, H, Lq, Dh = q.shape
    Lk = k.shape[2]
    tq, tkv = _tile(Lq, tq), _tile(Lk, tkv)
    scale = 1.0 / math.sqrt(Dh)
    return pl.pallas_call(
        functools.partial(_attn_kernel, scale),
        grid=(B, H, Lq // tq, Lk // tkv),
        in_specs=[
            pl.BlockSpec((1, 1, tq, Dh), lambda b, h, qi, kv: (b, h, qi, 0)),
            pl.BlockSpec((1, 1, tkv, Dh), lambda b, h, qi, kv: (b, h, kv, 0)),
            pl.BlockSpec((1, 1, tkv, Dh), lambda b, h, qi, kv: (b, h, kv, 0)),
        ],
        out_specs=pl.BlockSpec((1, 1, tq, Dh), lambda b, h, qi, kv: (b, h, qi, 0)),
        out_shape=jax.ShapeDtypeStruct((B, H, Lq, Dh), q.dtype),
        scratch_shapes=[
            pltpu.VMEM((tq, 1), jnp.float32),
            pltpu.VMEM((tq, 1), jnp.float32),
            pltpu.VMEM((tq, Dh), jnp.float32),
        ],
        compiler_params=pltpu.CompilerParams(
            dimension_semantics=("parallel", "parallel", "parallel", "arbitrary"),
            vmem_limit_bytes=_VMEM_LIMIT),
    )(q, k, v)


# ---------------------------------------------------------------------------
# Plain-JAX glue
# ---------------------------------------------------------------------------
def _apply_rope(t, cos, sin):
    """Rotary (rotate-half convention), t:(B,H,L,D), cos/sin:(L,D)."""
    d = t.shape[-1]
    t1, t2 = t[..., : d // 2], t[..., d // 2:]
    rot = jnp.concatenate([-t2, t1], axis=-1)
    return t * cos + rot * sin


def init_params(key, cfg):
    D = cfg["embed_dim"]
    C = cfg["io_channels"]
    Dc = cfg["cond_token_dim"]
    Dg = cfg["global_cond_dim"]
    H = cfg["num_heads"]
    depth = cfg["depth"]
    Dh = D // H
    ff_inner = 4 * D
    keys = iter(jax.random.split(key, 64))
    w = lambda *shape: jax.random.normal(next(keys), shape, jnp.float32) * 0.02

    params = {
        # FourierFeatures(1, 256): weight (128, 1), std=1
        "fourier_w": jax.random.normal(next(keys), (128, 1), jnp.float32),
        "t_embed": {"w1": w(256, D), "b1": jnp.zeros((D,), jnp.float32),
                    "w2": w(D, D), "b2": jnp.zeros((D,), jnp.float32)},
        "cond_embed": {"w1": w(Dc, Dc), "w2": w(Dc, Dc)},          # no bias
        "global_embed": {"w1": w(Dg, Dg), "w2": w(Dg, Dg)},        # no bias
        # preprocess/postprocess 1x1 convs are explicitly zero-initialized in the module
        "pre_conv_w": jnp.zeros((C, C), jnp.float32),
        "post_conv_w": jnp.zeros((C, C), jnp.float32),
        "proj_in": w(C, D),
        "proj_out": w(D, C),
        # rotary inv_freq over full head dim
        "inv_freq": 1.0 / (10000.0 ** (jnp.arange(0, Dh, 2, dtype=jnp.float32) / Dh)),
        "layers": [],
    }
    for _ in range(depth):
        params["layers"].append({
            "pre_norm_g": jnp.ones((D,), jnp.float32),
            "qkv_w": w(D, 3 * D),
            "self_out_w": w(D, D),
            "ca_norm_g": jnp.ones((D,), jnp.float32),
            "q_w": w(D, D),
            "kv_w": w(Dc, 2 * D),
            "ca_out_w": w(D, D),
            "ff_norm_g": jnp.ones((D,), jnp.float32),
            "ff_proj_w": w(D, 2 * ff_inner),
            "ff_proj_b": jnp.zeros((2 * ff_inner,), jnp.float32),
            "ff_out_w": w(ff_inner, D),
            "ff_out_b": jnp.zeros((D,), jnp.float32),
        })
    return params


def diffusion_transformer_forward(params, x, t, cross_attn_cond, global_embed, cfg):
    B, C, T = x.shape
    D = cfg["embed_dim"]
    H = cfg["num_heads"]
    Dh = D // H
    Lc = cross_attn_cond.shape[1]
    ff_inner = 4 * D

    # ---- to_cond_embed: Linear -> SiLU -> Linear (no bias) ----
    cc = cross_attn_cond.reshape(B * Lc, -1)
    cc = linear(cc, params["cond_embed"]["w1"], act="silu")
    cond_flat = linear(cc, params["cond_embed"]["w2"])             # (B*Lc, Dc)

    # ---- to_global_embed: Linear -> SiLU -> Linear (no bias) ----
    g = linear(global_embed, params["global_embed"]["w1"], act="silu")
    g = linear(g, params["global_embed"]["w2"])

    # ---- timestep: FourierFeatures + MLP; the "+ global_embed" is fused as residual ----
    f = 2.0 * math.pi * (t[:, None] @ params["fourier_w"].T)       # (B, 128)
    ffeat = jnp.concatenate([jnp.cos(f), jnp.sin(f)], axis=-1).astype(x.dtype)
    te = linear(ffeat, params["t_embed"]["w1"], params["t_embed"]["b1"], act="silu")
    g = linear(te, params["t_embed"]["w2"], params["t_embed"]["b2"], residual=g)

    # ---- global_cond_type == 'prepend' ----
    prepend = g[:, None, :]                                        # (B, 1, D)
    prepend_len = 1

    # ---- preprocess_conv (1x1, zero-init) + residual (fused), NCT layout ----
    x_flat = jnp.transpose(x, (0, 2, 1)).reshape(B * T, C)         # b c t -> (b t) c
    x_flat = linear(x_flat, params["pre_conv_w"], residual=x_flat)

    # ---- ContinuousTransformer ----
    h = linear(x_flat, params["proj_in"]).reshape(B, T, D)
    h = jnp.concatenate([prepend, h], axis=1)                      # (B, L, D)
    L = T + prepend_len
    h_flat = h.reshape(B * L, D)

    pos = jnp.arange(L, dtype=jnp.float32)
    freqs = pos[:, None] * params["inv_freq"][None, :]             # (L, Dh/2)
    freqs = jnp.concatenate([freqs, freqs], axis=-1)               # (L, Dh)
    rope_cos = jnp.cos(freqs).astype(x.dtype)
    rope_sin = jnp.sin(freqs).astype(x.dtype)

    # NOTE: mask / prepend_mask / context_mask are all-True in this path, so no
    # additive attention bias is constructed or DMA'd (mathematically a no-op).

    def split_heads(y, length):
        return jnp.transpose(y.reshape(B, length, H, Dh), (0, 2, 1, 3))

    def merge_heads(y, length):
        return jnp.transpose(y, (0, 2, 1, 3)).reshape(B * length, H * Dh)

    for lyr in params["layers"]:
        # --- self attention (pre-LN fused into qkv proj, rotary, residual fused) ---
        qkv = ln_linear(h_flat, lyr["pre_norm_g"], lyr["qkv_w"]).reshape(B, L, 3 * D)
        q, k, v = jnp.split(qkv, 3, axis=-1)
        q = _apply_rope(split_heads(q, L), rope_cos, rope_sin)
        k = _apply_rope(split_heads(k, L), rope_cos, rope_sin)
        o = attention(q, k, split_heads(v, L))
        h_flat = linear(merge_heads(o, L), lyr["self_out_w"], residual=h_flat)

        # --- cross attention (pre-LN fused into q proj, residual fused) ---
        q = ln_linear(h_flat, lyr["ca_norm_g"], lyr["q_w"]).reshape(B, L, D)
        kv = linear(cond_flat, lyr["kv_w"]).reshape(B, Lc, 2 * D)
        k, v = jnp.split(kv, 2, axis=-1)
        o = attention(split_heads(q, L), split_heads(k, Lc), split_heads(v, Lc))
        h_flat = linear(merge_heads(o, L), lyr["ca_out_w"], residual=h_flat)

        # --- feed-forward: LN + GLU(SiLU) fused, then Linear with fused residual ---
        wa = lyr["ff_proj_w"][:, :ff_inner]
        wg = lyr["ff_proj_w"][:, ff_inner:]
        ba = lyr["ff_proj_b"][:ff_inner]
        bg = lyr["ff_proj_b"][ff_inner:]
        ff_h = ln_glu(h_flat, lyr["ff_norm_g"], wa, wg, ba, bg)
        h_flat = linear(ff_h, lyr["ff_out_w"], lyr["ff_out_b"], residual=h_flat)

    out = linear(h_flat, params["proj_out"]).reshape(B, L, C)

    # ---- drop prepended token, postprocess_conv (1x1, zero-init) + residual (fused) ----
    out = out[:, prepend_len:, :]                                  # (B, T, C)
    out_flat = out.reshape(B * T, C)
    out_flat = linear(out_flat, params["post_conv_w"], residual=out_flat)
    return jnp.transpose(out_flat.reshape(B, T, C), (0, 2, 1))     # (B, C, T) NCT


if __name__ == "__main__":
    cfg = dict(io_channels=8, patch_size=1, embed_dim=64, cond_token_dim=64,
               global_cond_dim=64, depth=2, num_heads=2)
    key = jax.random.PRNGKey(0)
    pkey, xkey, tkey, ckey, gkey = jax.random.split(key, 5)
    params = init_params(pkey, cfg)

    B, T, Lc = 2, 16, 8
    x = jax.random.normal(xkey, (B, cfg["io_channels"], T), jnp.float32)
    t = jax.random.uniform(tkey, (B,), jnp.float32)
    cross_attn_cond = jax.random.normal(ckey, (B, Lc, cfg["cond_token_dim"]), jnp.float32)
    global_embed = jax.random.normal(gkey, (B, cfg["global_cond_dim"]), jnp.float32)

    out = diffusion_transformer_forward(params, x, t, cross_attn_cond, global_embed, cfg)
    out = jax.block_until_ready(out)
    assert out.shape == (B, cfg["io_channels"], T), out.shape
    assert jnp.all(jnp.isfinite(out))
    print("KERNEL_OK")
</pallas_src>

<mosaic_0001>
module attributes {stable_mosaic.version = 11 : i64} {
  func.func @_linear_kernel(%arg0: i32, %arg1: i32, %arg2: i32, %arg3: memref<16x64xf32, #tpu.memory_space<vmem>>, %arg4: memref<64x64xf32, #tpu.memory_space<vmem>>, %arg5: memref<16x64xf32, #tpu.memory_space<vmem>>, %arg6: memref<16x64xf32, #tpu.memory_space<vmem>>) attributes {dimension_semantics = [#tpu.dimension_semantics<parallel>, #tpu.dimension_semantics<parallel>, #tpu.dimension_semantics<arbitrary>], iteration_bounds = array<i64: 1, 1, 1>, scalar_prefetch = 0 : i64, scratch_operands = 1 : i64, tpu.core_type = #tpu.core_type<tc>, window_params = [{transform_indices = @transform_0, window_bounds = array<i64: 16, 64>}, {transform_indices = @transform_1, window_bounds = array<i64: 64, 64>}, {transform_indices = @transform_2, window_bounds = array<i64: 16, 64>}]} {
    %c0_i32 = arith.constant 0 : i32
    %0 = arith.cmpi eq, %arg2, %c0_i32 : i32
    %1 = arith.extui %0 : i1 to i32
    %c0_i32_0 = arith.constant 0 : i32
    %2 = arith.cmpi ne, %1, %c0_i32_0 : i32
    scf.if %2 {
      %cst_10 = arith.constant 0.000000e+00 : f32
      %12 = vector.broadcast %cst_10 : f32 to vector<16x64xf32>
      %c0_11 = arith.constant 0 : index
      %c0_12 = arith.constant 0 : index
      %13 = vector.load %arg6[%c0_11, %c0_12] : memref<16x64xf32, #tpu.memory_space<vmem>>, vector<16x64xf32>
      tpu.vector_store %arg6[%c0_11, %c0_12], %12 {strides = array<i32>} : memref<16x64xf32, #tpu.memory_space<vmem>>, vector<16x64xf32>,
    } else {
    }
    %c0 = arith.constant 0 : index
    %c0_1 = arith.constant 0 : index
    %3 = vector.load %arg6[%c0, %c0_1] : memref<16x64xf32, #tpu.memory_space<vmem>>, vector<16x64xf32>
    %c0_2 = arith.constant 0 : index
    %c0_3 = arith.constant 0 : index
    %4 = vector.load %arg3[%c0_2, %c0_3] : memref<16x64xf32, #tpu.memory_space<vmem>>, vector<16x64xf32>
    %c0_4 = arith.constant 0 : index
    %c0_5 = arith.constant 0 : index
    %5 = vector.load %arg4[%c0_4, %c0_5] : memref<64x64xf32, #tpu.memory_space<vmem>>, vector<64x64xf32>
    %cst = arith.constant dense<0.000000e+00> : vector<16x64xf32>
    %6 = tpu.matmul %4, %5, %cst {dimension_numbers = #tpu.dot_dimension_numbers<[1], [0], [0], [1], [0, 0, 1, 1], [], []>} : vector<16x64xf32>, vector<64x64xf32>, vector<16x64xf32> -> vector<16x64xf32>
    %7 = arith.addf %3, %6 : vector<16x64xf32>
    %c0_6 = arith.constant 0 : index
    %c0_7 = arith.constant 0 : index
    %8 = vector.load %arg6[%c0_6, %c0_7] : memref<16x64xf32, #tpu.memory_space<vmem>>, vector<16x64xf32>
    tpu.vector_store %arg6[%c0_6, %c0_7], %7 {strides = array<i32>} : memref<16x64xf32, #tpu.memory_space<vmem>>, vector<16x64xf32>,
    %c0_i32_8 = arith.constant 0 : i32
    %9 = arith.cmpi eq, %arg2, %c0_i32_8 : i32
    %10 = arith.extui %9 : i1 to i32
    %c0_i32_9 = arith.constant 0 : i32
    %11 = arith.cmpi ne, %10, %c0_i32_9 : i32
    scf.if %11 {
      %c0_10 = arith.constant 0 : index
      %c0_11 = arith.constant 0 : index
      %12 = vector.load %arg6[%c0_10, %c0_11] : memref<16x64xf32, #tpu.memory_space<vmem>>, vector<16x64xf32>
      %13 = arith.negf %12 : vector<16x64xf32>
      %14 = math.exp %13 : vector<16x64xf32>
      %cst_12 = arith.constant 1.000000e+00 : f32
      %15 = vector.broadcast %cst_12 : f32 to vector<16x64xf32>
      %16 = arith.addf %15, %14 : vector<16x64xf32>
      %17 = arith.divf %15, %16 : vector<16x64xf32>
      %18 = arith.mulf %12, %17 : vector<16x64xf32>
      %c0_13 = arith.constant 0 : index
      %c0_14 = arith.constant 0 : index
      %19 = vector.load %arg5[%c0_13, %c0_14] : memref<16x64xf32, #tpu.memory_space<vmem>>, vector<16x64xf32>
      tpu.vector_store %arg5[%c0_13, %c0_14], %18 {strides = array<i32>} : memref<16x64xf32, #tpu.memory_space<vmem>>, vector<16x64xf32>,
    } else {
    }
    return
  }
  func.func @transform_0(%arg0: i32, %arg1: i32, %arg2: i32) -> (i32, i32) {
    %c0_i32 = arith.constant 0 : i32
    return %arg0, %arg2 : i32, i32
  }
  func.func @transform_1(%arg0: i32, %arg1: i32, %arg2: i32) -> (i32, i32) {
    %c0_i32 = arith.constant 0 : i32
    return %arg2, %arg1 : i32, i32
  }
  func.func @transform_2(%arg0: i32, %arg1: i32, %arg2: i32) -> (i32, i32) {
    %c0_i32 = arith.constant 0 : i32
    return %arg0, %arg1 : i32, i32
  }
}

</mosaic_0001>

<bundles_post_ra>
// kernel: tpu_custom_call.1
= control target key start
LH: loop header
LB: loop body
LE: loop exit
PB: predicated region body
PF: predicated region fallthrough
CT: control target
= control target key end

     0   :  { %7 = vsyncpa [#allocation4], 0  ;;  %s393_s0 = inlined_call_operand.hbm [shape: f32[16,64], index: 0, kind: input, shape index: {}]   ;;  %s394_s1 = inlined_call_operand.hbm [shape: f32[64,64], index: 1, kind: input, shape index: {}]   ;;  %s395_s2 = inlined_call_operand.hbm [shape: f32[16,64], index: 2, kind: output, shape index: {}]  }
   0x1   :  { %8 = vsyncpa [#allocation7], 0 }
   0x2   :  { %9 = vsyncpa [#allocation5], 0  ;;  %s319_s9 = smov [#allocation3]   ;;  %s247_s13 = scalar_lea.hbm %s393_s0, 256 }
   0x3   :  { %s15_s10 = sshll.u32 %s319_s9, 4  ;;  %p248_p0 = scmp.ne.s32.totalorder %s393_s0, %s247_s13  ;;  %s16_s10 = int_to_ptr.vmem [resolvable:$true] %s15_s10 }
   0x4   :  { %p251_p1 = scmp.lt.u32.totalorder %s247_s13, %s393_s0 }
   0x6   :  { %p253_p2 = pnand %p251_p1, %p248_p0 }
   0x8   :  { %256 = shalt.err (!%p253_p2)
}
   0x9   :  { %s257_s18 = scalar_lea.vmem %s16_s10, 256  ;;  %p262_p4 = scmp.lt.s32.totalorder %s16_s10, %s16_s10 }
   0xa   :  { %p258_p3 = scmp.ne.s32.totalorder %s16_s10, %s257_s18  ;;  %p263_p5 = scmp.lt.s32.totalorder %s257_s18, %s257_s18 }
   0xc   :  { %p264_p6 = por %p263_p5, %p262_p4 }
   0xe   :  { %p265_p7 = pnand %p264_p6, %p258_p3 }
  0x10   :  { %268 = shalt.err (!%p265_p7)
}
  0x11   :  { %s320_s19 = smov 128   ;;  %s321_s20 = smov 8  }
  0x12   :  { %21 = dma.hbm_to_vmem [thread:$0]  %s393_s0, 256, %s16_s10, [#allocation4], %s320_s19, %s320_s19, %s321_s20  }
  0x13   :  { %s322_s23 = smov [#allocation6]   ;;  %s269_s27 = scalar_lea.hbm %s394_s1, 1024 }
  0x14   :  { %s27_s24 = sshll.u32 %s322_s23, 4  ;;  %p270_p8 = scmp.ne.s32.totalorder %s394_s1, %s269_s27  ;;  %s28_s24 = int_to_ptr.vmem [resolvable:$true] %s27_s24 }
  0x15   :  { %p273_p9 = scmp.lt.u32.totalorder %s269_s27, %s394_s1 }
  0x17   :  { %p275_p10 = pnand %p273_p9, %p270_p8 }
  0x19   :  { %278 = shalt.err (!%p275_p10)
}
  0x1a   :  { %s279_s4 = scalar_lea.vmem %s28_s24, 1024  ;;  %p284_p12 = scmp.lt.s32.totalorder %s28_s24, %s28_s24 }
  0x1b   :  { %p280_p11 = scmp.ne.s32.totalorder %s28_s24, %s279_s4  ;;  %p285_p13 = scmp.lt.s32.totalorder %s279_s4, %s279_s4 }
  0x1d   :  { %p286_p0 = por %p285_p13, %p284_p12 }
  0x1f   :  { %p287_p1 = pnand %p286_p0, %p280_p11 }
  0x21   :  { %290 = shalt.err (!%p287_p1)
}
  0x22   :  { %33 = dma.hbm_to_vmem [thread:$0]  %s394_s1, 1024, %s28_s24, [#allocation7], %s320_s19, %s320_s19, %s321_s20  }
  0x23   :  { %313 = dma.done.wait [#allocation4], 256  }
  0x24   :  { %314 = vsyncadd [#allocation4], 4294967040 }
  0x25   :  { %315 = dma.done.wait [#allocation7], 1024  }
  0x26   :  { %316 = vsyncadd [#allocation7], 4294966272  ;;  %vm44_vm0 = vcmask 523264   ;;  %v323_v0 = vmov 0.0   ;;  %v51_v1 = vld [vmem:[#allocation6] sm:$0xff]  ;;  %v52_v2 = vld [vmem:[#allocation6 + $0x8] sm:$0xff] }
  0x27   :  { %46 = vst.msk [vmem:[#allocation2 + $0x8] sm:$0xff] %vm44_vm0, %v323_v0  ;;  %45 = vst.msk [vmem:[#allocation2] sm:$0xff] %vm44_vm0, %v323_v0  ;;  %v53_v3 = vld [vmem:[#allocation6 + $0x10] sm:$0xff]  ;;  %v217_v4 = vpack.c.bf16 %v52_v2, %v51_v1  ;;  %v54_v5 = vld [vmem:[#allocation6 + $0x18] sm:$0xff]  ;;  %s324_s1 = smov [#allocation8]  }
  0x28   :  { %v221_v6 = vpack.c.bf16 %v54_v5, %v53_v3  ;;  %v55_v7 = vld [vmem:[#allocation6 + $0x20] sm:$0xff]  ;;  %v56_v8 = vld [vmem:[#allocation6 + $0x28] sm:$0xff]  ;;  %v49_v9 = vld [vmem:[#allocation3] sm:$0xff]  ;;  %s171_s6 = sshll.u32 %s324_s1, 4  ;;  %s172_s6 = int_to_ptr.vmem [resolvable:$true] %s171_s6 }
  0x29   :  { %218 = vmatprep.subr.bf16.mxu0 %v217_v4  ;;  %214 = vmatprep.mubr.msk.f32.mxu0 %vm44_vm0, %v49_v9  ;;  %v225_v10 = vpack.c.bf16 %v56_v8, %v55_v7  ;;  %v57_v11 = vld [vmem:[#allocation6 + $0x30] sm:$0xff]  ;;  %v58_v12 = vld [vmem:[#allocation6 + $0x38] sm:$0xff]  ;;  %s291_s7 = scalar_lea.vmem %s172_s6, 256  ;;  %p296_p3 = scmp.lt.s32.totalorder %s172_s6, %s172_s6 }
  0x2a   :  { %220 = vmatpush3.bf16.msra.mxu0 %v217_v4  ;;  %v229_v13 = vpack.c.bf16 %v58_v12, %v57_v11  ;;  %v50_v14 = vld [vmem:[#allocation3 + $0x8] sm:$0xff]  ;;  %p292_p2 = scmp.ne.s32.totalorder %s172_s6, %s291_s7  ;;  %p297_p4 = scmp.lt.s32.totalorder %s291_s7, %s291_s7 }
  0x2b   :  { %222 = vmatprep.subr.bf16.mxu0 %v221_v6 }
  0x2c   :  { %p298_p5 = por %p297_p4, %p296_p3 }
  0x2e   :  { %224 = vmatpush3.bf16.msra.mxu0 %v221_v6  ;;  %v48_v15 = vld [vmem:[#allocation2 + $0x8] sm:$0xff]  ;;  %v47_v16 = vld [vmem:[#allocation2] sm:$0xff]  ;;  %p299_p6 = pnand %p298_p5, %p292_p2 }
  0x2f   :  { %226 = vmatprep.subr.bf16.mxu0 %v225_v10 }
  0x32   :  { %228 = vmatpush3.bf16.msra.mxu0 %v225_v10 }
  0x33   :  { %230 = vmatprep.subr.bf16.mxu0 %v229_v13 }
  0x36   :  { %232 = vmatpush3.bf16.msra.mxu0 %v229_v13 }
  0x39   :  { %215 = vmatmul.mubr.msk.f32.vlgmr.msra.gmra.mrb[0].mxu0 %vm44_vm0, %v50_v14 }
 0x10c   :  { %v216_v17 = vpop.f32.mrb[0].mxu0 }
 0x10d   :  { %v142_v18 = vadd.f32 %v216_v17, %v48_v15  ;;  %v132_v19 = vpop.f32.mrb[1].mxu0 }
 0x10e   :  { %v141_v20 = vadd.f32 %v132_v19, %v47_v16 }
 0x10f   :  { %144 = vst.msk [vmem:[#allocation2 + $0x8] sm:$0xff] %vm44_vm0, %v142_v18 }
 0x110   :  { %143 = vst.msk [vmem:[#allocation2] sm:$0xff] %vm44_vm0, %v141_v20 }
 0x116   :  { %v149_v21 = vld [vmem:[#allocation2 + $0x8] sm:$0xff] }
 0x117   :  { %v148_v22 = vld [vmem:[#allocation2] sm:$0xff]  ;;  %v187_v23 = vmul.f32 -1.442695, %v149_v21 }
 0x118   :  { %v186_v24 = vmul.f32 -1.442695, %v148_v22 }
 0x119   :  { %239 = vpow2.f32 %v187_v23 }
 0x11a   :  { %241 = vpow2.f32 %v186_v24 }
 0x123   :  { %v240_v25 = vpop.eup %239 }
 0x124   :  { %v242_v26 = vpop.eup %241  ;;  %v157_v27 = vadd.f32 1.0, %v240_v25 }
 0x125   :  { %v156_v28 = vadd.f32 1.0, %v242_v26 }
 0x126   :  { %243 = vrcp.f32 %v157_v27 }
 0x127   :  { %245 = vrcp.f32 %v156_v28 }
 0x130   :  { %v244_v29 = vpop.eup %243 }
 0x131   :  { %v246_v30 = vpop.eup %245  ;;  %v163_v31 = vmul.f32 %v244_v29, %v149_v21 }
 0x132   :  { %v162_v32 = vmul.f32 %v246_v30, %v148_v22 }
 0x133   :  { %165 = vst.msk [vmem:[#allocation8 + $0x8] sm:$0xff] %vm44_vm0, %v163_v31 }
 0x134   :  { %164 = vst.msk [vmem:[#allocation8] sm:$0xff] %vm44_vm0, %v162_v32 }
 0x135   :  { %302 = shalt.err (!%p299_p6)
}
 0x136   :  { %s303_s10 = scalar_lea.hbm %s395_s2, 256 }
 0x137   :  { %p304_p7 = scmp.ne.s32.totalorder %s395_s2, %s303_s10  ;;  %p307_p8 = scmp.lt.u32.totalorder %s303_s10, %s395_s2 }
 0x139   :  { %p309_p9 = pnand %p307_p8, %p304_p7 }
 0x13b   :  { %312 = shalt.err (!%p309_p9)
}
 0x13c   :  { %177 = dma.vmem_to_hbm [thread:$0]  %s172_s6, 256, %s395_s2, [#allocation5], %s320_s19, %s320_s19, %s321_s20  }
 0x13d   :  { %317 = dma.done.wait [#allocation5], 256  }
 0x13e   :  { %318 = vsyncadd [#allocation5], 4294967040 }
 0x13f   :  { %181 = vsyncpa [#allocation4], 1 }
 0x140   :  { %182 = vsyncpa [#allocation7], 1 }
 0x141   :  { %183 = vsyncpa [#allocation5], 1 }

</bundles_post_ra>
